<compile_context>
chip_gen: v7x
topology: tpu7x:2x2x1
jax: 0.10.0
libtpu: 0.0.40
codegen_flags: <defaults>
</compile_context>

<pallas_src>
import numpy as np
import jax
import jax.numpy as jnp
from jax.experimental import pallas as pl
from jax.experimental.pallas import tpu as pltpu


# ----------------------------------------------------------------------------
# Kernels
# ----------------------------------------------------------------------------
def _softmax_lane_kernel(x_ref, o_ref):
    # block: (tr, N); numerically-stable softmax over the lane (minor) axis
    x = x_ref[...].astype(jnp.float32)
    m = jnp.max(x, axis=-1, keepdims=True)
    e = jnp.exp(x - m)
    s = jnp.sum(e, axis=-1, keepdims=True)
    o_ref[...] = (e * pl.reciprocal(s, approx=False)).astype(o_ref.dtype)


def _softmax_sublane_kernel(x_ref, o_ref):
    # block: (tp, C, tq); softmax over the middle (second-minor) axis C
    x = x_ref[...].astype(jnp.float32)
    m = jnp.max(x, axis=1, keepdims=True)
    e = jnp.exp(x - m)
    s = jnp.sum(e, axis=1, keepdims=True)
    o_ref[...] = (e * pl.reciprocal(s, approx=False)).astype(o_ref.dtype)


# ----------------------------------------------------------------------------
# Tiling helpers
# ----------------------------------------------------------------------------
_MIN_BLOCK = 512 << 10     # keep blocks >= ~0.5 MiB so DMA bursts stay long
_LANE = 128


def _round_up(x, m):
    return -(-x // m) * m


def _ceil_div(a, b):
    return -(-a // b)


def _chip_params():
    """Return (num_tensorcores_hint, vmem_limit_bytes)."""
    try:
        vmem_cap = int(pltpu.get_tpu_info().vmem_capacity_bytes)
    except Exception:
        vmem_cap = 128 << 20
    # v7x: 64 MiB VMEM per TC and 2 TCs/chip; v5e/v6e: 128 MiB, 1 TC.
    num_cores = 2 if vmem_cap <= (64 << 20) else 1
    vmem_limit = int(min(max(vmem_cap * 3 // 4, 32 << 20), 64 << 20))
    return num_cores, vmem_limit


def _block_budget(itemsize, vmem_limit):
    # Per-step VMEM ~= 2x input + 2x output double-buffers plus ~2 f32 upcast
    # temporaries of the block -> keep the total around half the scoped limit.
    overhead = 4.0 + 2.0 * (4.0 / itemsize)
    return int(0.5 * vmem_limit / overhead)


def _lane_tile(R, N, itemsize, budget, target_steps):
    """Row-tile for the (R, N) lane-reduction kernel (None -> too large)."""
    sub = 16 if itemsize == 2 else 8
    row_bytes = _round_up(N, _LANE) * itemsize          # VMEM bytes per row
    if sub * row_bytes > budget:
        return None
    tr_budget = max(sub, (budget // row_bytes) // sub * sub)
    tr_steps = _round_up(_ceil_div(R, target_steps), sub)
    tr_min = _round_up(_ceil_div(_MIN_BLOCK, row_bytes), sub)
    tr = min(tr_budget, max(tr_steps, tr_min))
    tr = max(tr, sub)
    return R if tr >= R else tr


def _sublane_tiles(P, C, Q, itemsize, budget, target_steps):
    """(tp, tq) for the (P, C, Q) sublane-reduction kernel (None -> too large)."""
    sub = 16 if itemsize == 2 else 8
    Cp = _round_up(C, sub)
    slab128 = Cp * _LANE * itemsize                     # one (1, C, 128) slab
    if slab128 > budget:
        return None
    Qp = _round_up(Q, _LANE)
    full_q = Cp * Qp * itemsize                         # one (1, C, Q) slab
    if full_q > budget:
        # Must split Q (tp = 1); block lane dim stays a multiple of 128.
        want_q = max(1, _ceil_div(target_steps, max(P, 1)))
        tq_steps = _round_up(_ceil_div(Q, want_q), _LANE)
        tq_min = _round_up(_ceil_div(_MIN_BLOCK, Cp * itemsize), _LANE)
        tq_budget = max(_LANE, (budget // slab128) * _LANE)
        tq = min(tq_budget, max(tq_steps, tq_min))
        tq = max(_LANE, tq)
        return 1, (Q if tq >= Q else tq)
    if P >= target_steps:
        # Plenty of independent P rows: batch them to amortize per-step
        # overhead and lengthen DMAs (key for small H*W with large batch).
        tp_budget = max(1, budget // full_q)
        tp_steps = max(1, _ceil_div(P, target_steps))
        tp_min = max(1, _ceil_div(_MIN_BLOCK, full_q))
        tp = min(tp_budget, max(tp_steps, tp_min))
        return min(tp, P), Q
    # Few P rows: split Q (multiples of 128) so every TC gets pipelined steps,
    # but never shrink blocks below the minimum DMA-friendly size.
    if Q >= 2 * _LANE:
        want_q = max(1, _ceil_div(target_steps, max(P, 1)))
        tq = _round_up(_ceil_div(Q, want_q), _LANE)
        tq_min = _round_up(_ceil_div(_MIN_BLOCK, Cp * itemsize), _LANE)
        tq = max(tq, tq_min)
        return 1, (Q if tq >= Q else tq)
    return 1, Q


# ----------------------------------------------------------------------------
# Wrapper
# ----------------------------------------------------------------------------
def pallas_softmax(x, dim):
    """softmax(x, dim) matching torch.nn.functional.softmax semantics."""
    ndim = x.ndim
    dim = dim % ndim
    shape = x.shape
    itemsize = x.dtype.itemsize
    E = int(x.size)
    if E == 0:
        return x

    num_cores, vmem_limit = _chip_params()
    budget = _block_budget(itemsize, vmem_limit)
    target_steps = 4 * num_cores                    # ~4 pipeline steps per TC
    cost = pl.CostEstimate(flops=4 * E, transcendentals=E,
                           bytes_accessed=2 * E * itemsize)

    def _cparams(sem):
        return pltpu.CompilerParams(dimension_semantics=sem,
                                    vmem_limit_bytes=vmem_limit)

    if dim == ndim - 1:
        # ---- softmax axis is already the minor (lane) axis: rows x N -------
        N = shape[-1]
        R = E // N
        if N < _LANE:
            # TODO(synk): dedicated small-N layout (pack several rows into one
            # lane-dense vreg); lane-starved blocks + masked stores make the
            # generic lane kernel slower than XLA's softmax here.
            return jax.nn.softmax(x, axis=dim)
        tr = _lane_tile(R, N, itemsize, budget, target_steps)
        if tr is None:
            # TODO(synk): streaming (online max/sum) kernel with a grid axis
            # over N for rows too big to fit one VMEM block.
            return jax.nn.softmax(x, axis=dim)
        x2 = x.reshape(R, N)                         # free: no data movement
        out2 = pl.pallas_call(
            _softmax_lane_kernel,
            out_shape=jax.ShapeDtypeStruct((R, N), x.dtype),
            grid_spec=pltpu.PrefetchScalarGridSpec(
                num_scalar_prefetch=0,
                grid=(pl.cdiv(R, tr),),
                in_specs=[pl.BlockSpec((tr, N), lambda i: (i, 0))],
                out_specs=pl.BlockSpec((tr, N), lambda i: (i, 0)),
            ),
            compiler_params=_cparams(("parallel",)),
            cost_estimate=cost,
        )(x2)
        return out2.reshape(shape)

    # ---- softmax over a non-minor axis: free view (P, C, Q), reduce over C -
    P = int(np.prod(shape[:dim], dtype=np.int64)) if dim > 0 else 1
    C = shape[dim]
    Q = int(np.prod(shape[dim + 1:], dtype=np.int64))
    tiles = _sublane_tiles(P, C, Q, itemsize, budget, target_steps)
    if tiles is None:
        # TODO(synk): streaming (online max/sum) kernel with an 'arbitrary'
        # grid axis over C for softmax axes too large for one (1, C, 128) slab.
        return jax.nn.softmax(x, axis=dim)
    tp, tq = tiles
    x3 = x.reshape(P, C, Q)                          # free: no data movement
    out3 = pl.pallas_call(
        _softmax_sublane_kernel,
        out_shape=jax.ShapeDtypeStruct((P, C, Q), x.dtype),
        grid_spec=pltpu.PrefetchScalarGridSpec(
            num_scalar_prefetch=0,
            grid=(pl.cdiv(P, tp), pl.cdiv(Q, tq)),
            in_specs=[pl.BlockSpec((tp, C, tq), lambda i, j: (i, 0, j))],
            out_specs=pl.BlockSpec((tp, C, tq), lambda i, j: (i, 0, j)),
        ),
        compiler_params=_cparams(("parallel", "parallel")),
        cost_estimate=cost,
    )(x3)
    return out3.reshape(shape)


if __name__ == "__main__":
    key = jax.random.PRNGKey(0)
    k1, k2 = jax.random.split(key)

    # FSoftmax(dim=1): NCHW input, softmax over the channel axis
    # (sublane-reduction kernel, lane-dense minor axis Q = H*W).
    x = jax.random.normal(k1, (2, 4, 16, 16), dtype=jnp.float32)
    y = jax.block_until_ready(pallas_softmax(x, 1))
    assert y.shape == x.shape and y.dtype == x.dtype
    np.testing.assert_allclose(np.asarray(y),
                               np.asarray(jax.nn.softmax(x, axis=1)),
                               rtol=1e-5, atol=1e-6)

    # Minor-axis path (lane-reduction kernel, N >= 128).
    x2 = jax.random.normal(k2, (2, 8, 256), dtype=jnp.float32)
    y2 = jax.block_until_ready(pallas_softmax(x2, -1))
    np.testing.assert_allclose(np.asarray(y2),
                               np.asarray(jax.nn.softmax(x2, axis=-1)),
                               rtol=1e-5, atol=1e-6)

    # Small-N minor-axis dispatch guard (falls back to XLA softmax).
    y3 = jax.block_until_ready(pallas_softmax(x, -1))
    np.testing.assert_allclose(np.asarray(y3),
                               np.asarray(jax.nn.softmax(x, axis=-1)),
                               rtol=1e-5, atol=1e-6)

    print("KERNEL_OK")
</pallas_src>

<mosaic_0001>
module attributes {stable_mosaic.version = 11 : i64} {
  func.func @_softmax_sublane_kernel(%arg0: i32, %arg1: i32, %arg2: memref<1x4x256xf32, #tpu.memory_space<vmem>>, %arg3: memref<1x4x256xf32, #tpu.memory_space<vmem>>) attributes {dimension_semantics = [#tpu.dimension_semantics<parallel>, #tpu.dimension_semantics<parallel>], iteration_bounds = array<i64: 2, 1>, scalar_prefetch = 0 : i64, scratch_operands = 0 : i64, tpu.core_type = #tpu.core_type<tc>, window_params = [{transform_indices = @transform_0, window_bounds = array<i64: 1, 4, 256>}, {transform_indices = @transform_1, window_bounds = array<i64: 1, 4, 256>}]} {
    %c0 = arith.constant 0 : index
    %c0_0 = arith.constant 0 : index
    %c0_1 = arith.constant 0 : index
    %0 = vector.load %arg2[%c0, %c0_0, %c0_1] : memref<1x4x256xf32, #tpu.memory_space<vmem>>, vector<1x4x256xf32>
    %cst = arith.constant dense<0xFF800000> : vector<1x256xf32>
    %1 = vector.multi_reduction <maximumf>, %0, %cst [1] : vector<1x4x256xf32> to vector<1x256xf32>
    %2 = vector.shape_cast %1 : vector<1x256xf32> to vector<1x1x256xf32>
    %3 = vector.broadcast %2 : vector<1x1x256xf32> to vector<1x4x256xf32>
    %4 = arith.subf %0, %3 : vector<1x4x256xf32>
    %5 = math.exp %4 : vector<1x4x256xf32>
    %cst_2 = arith.constant dense<0.000000e+00> : vector<1x256xf32>
    %6 = vector.multi_reduction <add>, %5, %cst_2 [1] : vector<1x4x256xf32> to vector<1x256xf32>
    %7 = vector.shape_cast %6 : vector<1x256xf32> to vector<1x1x256xf32>
    %8 = tpu.reciprocal %7 : vector<1x1x256xf32> -> vector<1x1x256xf32>
    %9 = vector.broadcast %8 : vector<1x1x256xf32> to vector<1x4x256xf32>
    %10 = arith.mulf %5, %9 : vector<1x4x256xf32>
    %c0_3 = arith.constant 0 : index
    %c0_4 = arith.constant 0 : index
    %c0_5 = arith.constant 0 : index
    %11 = vector.load %arg3[%c0_3, %c0_4, %c0_5] : memref<1x4x256xf32, #tpu.memory_space<vmem>>, vector<1x4x256xf32>
    tpu.vector_store %arg3[%c0_3, %c0_4, %c0_5], %10 {strides = array<i32>} : memref<1x4x256xf32, #tpu.memory_space<vmem>>, vector<1x4x256xf32>,
    return
  }
  func.func @transform_0(%arg0: i32, %arg1: i32) -> (i32, i32, i32) {
    %c0_i32 = arith.constant 0 : i32
    %c0_i32_0 = arith.constant 0 : i32
    return %arg0, %c0_i32, %arg1 : i32, i32, i32
  }
  func.func @transform_1(%arg0: i32, %arg1: i32) -> (i32, i32, i32) {
    %c0_i32 = arith.constant 0 : i32
    %c0_i32_0 = arith.constant 0 : i32
    return %arg0, %c0_i32, %arg1 : i32, i32, i32
  }
}

</mosaic_0001>

<bundles_post_ra>
// kernel: tpu_custom_call.1
= control target key start
LH: loop header
LB: loop body
LE: loop exit
PB: predicated region body
PF: predicated region fallthrough
CT: control target
= control target key end

     0   :  { %6 = vsyncpa [#allocation3], 0  ;;  %s697_s0 = inlined_call_operand.hbm [shape: f32[2,4,256], index: 0, kind: input, shape index: {}]   ;;  %s698_s1 = inlined_call_operand.hbm [shape: f32[2,4,256], index: 1, kind: output, shape index: {}]  }
   0x1   :  { %8 = vsyncpa [#allocation3 + $0x1], 0 }
   0x2   :  { %9 = vsyncpa [#allocation4], 0 }
   0x3   :  { %11 = vsyncpa [#allocation4 + $0x1], 0  ;;  %s517_s6 = smov 0   ;;  %s519_s7 = smov 0  }
   0x4   :  { %s521_s8 = smov 0   ;;  %s523_s9 = smov 0  }
   0x5   :  { %s525_s10 = smov 0   ;;  %s527_s11 = smov 0  }
   0x6 LB: > { %s305_s12 = sadd.s32 4294967295, %s503_s11   ;;  %s306_s13 = sadd.s32 4294967294, %s503_s11   ;;  %s503_s11 = sphi %s527_s11, %s17_s11   ;;  %s499_s10 = sphi %s525_s10, %s714_s10   ;;  %s495_s9 = sphi %s523_s9, %s713_s9   ;;  %s491_s8 = sphi %s521_s8, %s712_s8   ;;  %s487_s7 = sphi %s519_s7, %s711_s7   ;;  %s483_s6 = sphi %s517_s6, %s710_s6  }
   0x7   : > { %s29_s14 = sadd.s32 1, %s499_s10  ;;  %s38_s15 = sadd.s32 1, %s491_s8 }
   0x8   : > { %p31_p0 = scmp.ge.s32.totalorder %s29_s14, 2  ;;  %p45_p1 = scmp.ne.s32.totalorder %s491_s8, %s487_s7 }
   0x9   : > { %p46_p2 = scmp.eq.s32.totalorder %s503_s11, 0  ;;  %p51_p3 = scmp.ne.s32.totalorder %s487_s7, %s483_s6 }
   0xa   : > { %s716_s14 = smov (%p31_p0, %s29_s14), 0  ;;  %p52_p5 = scmp.eq.s32.totalorder %s305_s12, 0 }
   0xb   : > { %p558_p4 = por %p46_p2, %p45_p1  ;;  %s33_s17 = ssub.s32 %s499_s10, %s716_s14 }
   0xc   : > { %p77_p6 = scmp.eq.s32.totalorder %s305_s12, 1  ;;  %p36_p7 = scmp.eq.s32.totalorder %s33_s17, 0 }
   0xd   : > { %p564_p8 = por %p52_p5, %p51_p3  ;;  %p83_p10 = scmp.eq.s32.totalorder %s306_s13, 1 }
   0xe   : > { %p568_p9 = por %p77_p6, %p45_p1  ;;  %p334_p13 = scmp.lt.s32.totalorder %s503_s11, 2 }
   0xf   : > { %s573_s20 = scalar_select %p36_p7, %s491_s8, %s38_s15  }
  0x10   : > { %s702_s19 = scalar_select %p568_p9, 1, 0 }
  0x11   : > { %p575_p11 = por %p83_p10, %p51_p3  ;;  %s103_s22 = sand.u32 1, %s491_s8  }
  0x12   : > { %s309_s23 = sshll.u32 %s103_s22, 3  ;;  %s320_s24 = sshll.u32 %s499_s10, 7 }
  0x13   : > { %s703_s21 = scalar_select %p575_p11, 1, 0 }
  0x14   : > { %s586_s27 = scalar_lea.hbm %s697_s0, %s320_s24  ;;  %s107_s28 = scalar_lea.vmem [#allocation2], %s309_s23 }
  0x15   : > { %s117_s29 = sshll.u32 %s107_s28, 4  ;;  %p592_p0 = pnand %p334_p13, %p558_p4  ;;  %s588_s29 = int_to_ptr.vmem [resolvable:$true] %s117_s29 }
  0x16   : > { %s104_s2 = scalar_lea.sflag [#allocation3], %s103_s22  ;;  %s391_s3 = scalar_lea.hbm %s586_s27, 128 }
  0x17   : > { %p392_p3 = scmp.ne.s32.totalorder %s586_s27, %s391_s3  ;;  %p393_p5 = pneg %p592_p0 }
  0x18   : > { %s396_s12 = scalar_lea.hbm %s697_s0, 256  ;;  %p397_p4 = scmp.lt.u32.totalorder %s586_s27, %s697_s0 }
  0x19   : > { %p394_p6 = pnand %p393_p5, %p392_p3  ;;  %p398_p10 = scmp.lt.u32.totalorder %s396_s12, %s391_s3 }
  0x1a   : > { %p400_p12 = scmp.lt.u32.totalorder %s391_s3, %s586_s27 }
  0x1b   : > { %p395_p7 = pneg %p394_p6  ;;  %p399_p13 = por %p398_p10, %p397_p4 }
  0x1d   : > { %p401_p1 = por %p400_p12, %p399_p13 }
  0x1f   : > { %p402_p2 = pnand %p401_p1, %p395_p7 }
  0x21   : > { %405 = shalt.err (!%p402_p2)
}
  0x22   : > { %s406_s16 = scalar_lea.vmem %s588_s29, 128  ;;  %s505_s17 = smov [#allocation2]  }
  0x23   : > { %p407_p3 = scmp.ne.s32.totalorder %s588_s29, %s406_s16  ;;  %s411_s22 = sshll.u32 %s505_s17, 4  ;;  %s412_s22 = int_to_ptr.vmem [resolvable:$false] %s411_s22 }
  0x24   : > { %s413_s23 = scalar_lea.vmem %s412_s22, 256  ;;  %p414_p9 = scmp.lt.s32.totalorder %s588_s29, %s412_s22 }
  0x25   : > { %p409_p6 = pnand %p407_p3, %p393_p5  ;;  %p415_p4 = scmp.lt.s32.totalorder %s413_s23, %s406_s16 }
  0x27   : > { %p410_p11 = pneg %p409_p6  ;;  %p416_p10 = por %p415_p4, %p414_p9 }
  0x29   : > { %p417_p12 = pnand %p416_p10, %p410_p11 }
  0x2b   : > { %420 = shalt.err (!%p417_p12)
}
  0x2c   : > { %329 = dma.hbm_to_vmem [thread:$0]  (!%p592_p0), %s586_s27, 128, %s588_s29, %s104_s2  }
  0x2d   : > { %p705_p1 = scmp.lt.s32.totalorder %s503_s11, 3  ;;  %p706_p2 = scmp.ge.s32.totalorder %s503_s11, 1 }
  0x2f   : > { %p123_p5 = pnand %p706_p2, %p705_p1 }
  0x30   : > { %s628_s24 = sand.u32 (!%p123_p5), 1, %s487_s7  }
  0x31   : > { %126 = sbr.rel (%p123_p5) target bundleno = 134 (0x86), region = 24  ;;  %s313_s25 = sshll.u32 (!%p123_p5), %s628_s24, 3 }
  0x32   : > { %s129_s26 = scalar_lea.sflag (!%p123_p5), [#allocation3], %s628_s24  ;;  %s132_s28 = scalar_lea.vmem (!%p123_p5), [#allocation2], %s313_s25 }
  0x38   : > { %474 = dma.done.wait (%p564_p8), %s129_s26, 128  }
  0x39   : > { %476 = vsyncadd (%p564_p8), %s129_s26, 4294967168  ;;  %vm157_vm0 = vcmask 1043456   ;;  %v153_v0 = vld [vmem:[%s132_s28] sm:$0xff]  ;;  %s150_s18 = scalar_lea.vmem [#allocation5], %s313_s25  ;;  %s321_s29 = sshll.u32 %s495_s9, 7 }
  0x3a   : > { %v155_v1 = vcombine.high %v153_v0, %v153_v0  ;;  %v158_v2 = vsel %vm157_vm0, %v153_v0, -inf  ;;  %s221_s27 = sshll.u32 %s150_s18, 4  ;;  %s650_s3 = scalar_lea.hbm %s698_s1, %s321_s29  ;;  %s645_s27 = int_to_ptr.vmem [resolvable:$true] %s221_s27 }
  0x3b   : > { %v159_v3 = vrot.slane %v158_v2, 4  ;;  %s205_s4 = scalar_lea.sflag [#allocation4], %s628_s24  ;;  %s421_s5 = scalar_lea.vmem %s645_s27, 128 }
  0x3c   : > { %v165_v4 = vsel %vm157_vm0, %v155_v1, -inf  ;;  %p422_p8 = scmp.ne.s32.totalorder %s645_s27, %s421_s5  ;;  %p707_p9 = scmp.ne.s32.totalorder %s702_s19, 0 }
  0x3d   : > { %v160_v5 = vmax.f32 %v158_v2, %v159_v3  ;;  %v166_v6 = vrot.slane %v165_v4, 4  ;;  %s506_s9 = smov [#allocation5]  }
  0x3e   : > { %p423_p11 = pnand %p422_p8, %p707_p9  ;;  %s425_s12 = sshll.u32 %s506_s9, 4  ;;  %s426_s12 = int_to_ptr.vmem [resolvable:$false] %s425_s12 }
  0x3f   : > { %v161_v7 = vrot.slane %v160_v5, 2  ;;  %v167_v8 = vmax.f32 %v165_v4, %v166_v6  ;;  %s427_s13 = scalar_lea.vmem %s426_s12, 256  ;;  %p428_p7 = scmp.lt.s32.totalorder %s645_s27, %s426_s12 }
  0x40   : > { %p424_p0 = pneg %p423_p11  ;;  %p429_p13 = scmp.lt.s32.totalorder %s427_s13, %s421_s5 }
  0x41   : > { %v162_v9 = vmax.f32 %v160_v5, %v161_v7  ;;  %v168_v10 = vrot.slane %v167_v8, 2 }
  0x42   : > { %p430_p3 = por %p429_p13, %p428_p7 }
  0x43   : > { %v163_v11 = vrot.slane %v162_v9, 1  ;;  %v169_v12 = vmax.f32 %v167_v8, %v168_v10 }
  0x44   : > { %p431_p6 = pnand %p430_p3, %p424_p0 }
  0x45   : > { %v164_v13 = vmax.f32 %v162_v9, %v163_v11  ;;  %v170_v14 = vrot.slane %v169_v12, 1 }
  0x47   : > { %v171_v15 = vmax.f32 %v169_v12, %v170_v14 }
  0x49   : > { %v174_v16 = vcombine.low %v164_v13, %v171_v15 }
  0x4b   : > { %v176_v17 = vsub.f32 %v153_v0, %v174_v16 }
  0x4d   : > { %v177_v18 = vmul.f32 1.442695, %v176_v17 }
  0x4f   : > { %385 = vpow2.f32 %v177_v18 }
  0x59   : > { %v386_v19 = vpop.eup %385 }
  0x5a   : > { %v180_v20 = vcombine.high %v386_v19, %v386_v19  ;;  %v182_v21 = vsel %vm157_vm0, %v386_v19, 0.0 }
  0x5b   : > { %v183_v22 = vrot.slane %v182_v21, 4 }
  0x5c   : > { %v189_v23 = vsel %vm157_vm0, %v180_v20, 0.0 }
  0x5d   : > { %v184_v24 = vadd.f32 %v183_v22, %v182_v21  ;;  %v190_v25 = vrot.slane %v189_v23, 4 }
  0x5f   : > { %v185_v26 = vrot.slane %v184_v24, 2  ;;  %v191_v27 = vadd.f32 %v190_v25, %v189_v23 }
  0x61   : > { %v186_v28 = vadd.f32 %v185_v26, %v184_v24  ;;  %v192_v29 = vrot.slane %v191_v27, 2 }
  0x63   : > { %v187_v30 = vrot.slane %v186_v28, 1  ;;  %v193_v31 = vadd.f32 %v192_v29, %v191_v27 }
  0x65   : > { %v188_v32 = vadd.f32 %v187_v30, %v186_v28  ;;  %v194_v33 = vrot.slane %v193_v31, 1 }
  0x67   : > { %v195_v34 = vadd.f32 %v194_v33, %v193_v31  ;;  %387 = vrcp.f32 %v188_v32 }
  0x69   : > { %389 = vrcp.f32 %v195_v34 }
  0x71   : > { %v388_v35 = vpop.eup %387 }
  0x73   : > { %v390_v36 = vpop.eup %389 }
  0x74   : > { %v200_v37 = vcombine.low %v388_v35, %v390_v36 }
  0x76   : > { %v202_v38 = vmul.f32 %v386_v19, %v200_v37 }
  0x78   : > { %203 = vst [vmem:[%s150_s18] sm:$0xff] %v202_v38 }
  0x79   : > { %434 = shalt.err (!%p431_p6)
}
  0x7a   : > { %s435_s15 = scalar_lea.hbm %s650_s3, 128  ;;  %s439_s22 = scalar_lea.hbm %s698_s1, 256 }
  0x7b   : > { %p436_p4 = scmp.ne.s32.totalorder %s650_s3, %s435_s15  ;;  %p440_p1 = scmp.lt.u32.totalorder %s650_s3, %s698_s1 }
  0x7c   : > { %p441_p2 = scmp.lt.u32.totalorder %s439_s22, %s435_s15  ;;  %p443_p8 = scmp.lt.u32.totalorder %s435_s15, %s650_s3 }
  0x7d   : > { %p437_p10 = pnand %p436_p4, %p707_p9 }
  0x7e   : > { %p442_p5 = por %p441_p2, %p440_p1 }
  0x7f   : > { %p438_p12 = pneg %p437_p10 }
  0x80   : > { %p444_p11 = por %p443_p8, %p442_p5 }
  0x82   : > { %p445_p0 = pnand %p444_p11, %p438_p12 }
  0x84   : > { %448 = shalt.err (!%p445_p0)
}
  0x85   : > { %324 = dma.vmem_to_hbm [thread:$0]  (%p707_p9), %s645_s27, 128, %s650_s3, %s205_s4  }
  0x86 PF: > { %s233_s25 = sand.u32 1, %s483_s6   ;;  %p708_p7 = scmp.ne.s32.totalorder %s703_s21, 0 }
  0x87   : > { %p709_p13 = scmp.ge.s32.totalorder %s503_s11, 2  ;;  %s234_s26 = scalar_lea.sflag [#allocation4], %s233_s25 }
  0x89   : > { %p331_p3 = pnand %p709_p13, %p708_p7 }
  0x8b   : > { %478 = dma.done.wait (!%p331_p3), %s234_s26, 128  }
  0x8c   : > { %480 = vsyncadd (!%p331_p3), %s234_s26, 4294967168  ;;  %s17_s11 = sadd.s32 1, %s503_s11   ;;  %s710_s6 = smov %s487_s7 }
  0x8d   : > { %p14_p6 = scmp.ge.s32.totalorder %s17_s11, 4   ;;  %s711_s7 = smov %s491_s8 }
  0x8e   : > { %s712_s8 = smov %s573_s20  ;;  %s713_s9 = smov %s499_s10 }
  0x8f   : > { %s714_s10 = smov %s716_s14  ;;  %16 = sbr.rel (!%p14_p6) target bundleno = 6 (0x6), region = 69 }
  0x96   :  { %239 = vsyncpa [#allocation3], 1 }
  0x97   :  { %241 = vsyncpa [#allocation3 + $0x1], 1 }
  0x98   :  { %242 = vsyncpa [#allocation4], 1 }
  0x99   :  { %244 = vsyncpa [#allocation4 + $0x1], 1 }

</bundles_post_ra>
